<compile_context>
chip_gen: v5e
topology: v5e:2x2
jax: 0.10.0
libtpu: 0.0.40
codegen_flags: <defaults>
</compile_context>

<pallas_src>
import jax
import jax.numpy as jnp
from jax.experimental import pallas as pl
from jax.experimental.pallas import tpu as pltpu

N_STATES = 5    # CartPoleSwingUpDiscrete observation: [x, x_dot, cos(theta), sin(theta), theta_dot]
N_ACTIONS = 2   # discrete left/right
HIDDEN = 50

PAD_K = 8       # N_STATES padded to one sublane group
PAD_H = 128     # HIDDEN padded to one lane group
PAD_N = 128     # N_ACTIONS padded to one lane group (lane-dense output)

MAX_TILE_B = 512  # batch tile (rows per grid step) for large batches


def _round_up(n, m):
    return ((n + m - 1) // m) * m


def _mlp_kernel(x_ref, w1_ref, b1_ref, w2_ref, b2_ref, o_ref):
    # fc1: (tile_b, 8) @ (8, 128) -> single clean MXU pass (padded cols/rows are zero).
    h = jnp.dot(x_ref[...], w1_ref[...], preferred_element_type=jnp.float32)
    h = jnp.maximum(h + b1_ref[...], 0.0)          # bias broadcast + ReLU on the VPU
    # out: (tile_b, 128) @ (128, 128) -> MXU; padded W2 rows/cols are zero.
    q = jnp.dot(h, w2_ref[...], preferred_element_type=jnp.float32)
    o_ref[...] = q + b2_ref[...]                   # lane-dense (tile_b, 128) store


def prepare_params(w1, b1, w2, b2):
    """One-time layout/pad: call once and keep the result in the training state."""
    w1_p = jnp.zeros((PAD_K, PAD_H), jnp.float32).at[:N_STATES, :HIDDEN].set(w1.T)
    b1_p = jnp.zeros((1, PAD_H), jnp.float32).at[0, :HIDDEN].set(b1)
    w2_p = jnp.zeros((PAD_H, PAD_N), jnp.float32).at[:HIDDEN, :N_ACTIONS].set(w2.T)
    b2_p = jnp.zeros((1, PAD_N), jnp.float32).at[0, :N_ACTIONS].set(b2)
    return w1_p, b1_p, w2_p, b2_p


def _net_forward_padded(x, w1_p, b1_p, w2_p, b2_p):
    B = x.shape[0]
    tile_b = min(MAX_TILE_B, _round_up(B, 8))
    B_pad = _round_up(B, tile_b)

    # Pad x to a (B_pad, 8) tile-aligned slab (zeros elsewhere).
    x_p = jnp.zeros((B_pad, PAD_K), jnp.float32).at[:B, :N_STATES].set(x)

    vmem = pltpu.MemorySpace.VMEM
    out = pl.pallas_call(
        _mlp_kernel,
        out_shape=jax.ShapeDtypeStruct((B_pad, PAD_N), jnp.float32),
        grid=(B_pad // tile_b,),
        in_specs=[
            pl.BlockSpec((tile_b, PAD_K), lambda i: (i, 0), memory_space=vmem),
            pl.BlockSpec((PAD_K, PAD_H), lambda i: (0, 0), memory_space=vmem),
            pl.BlockSpec((1, PAD_H), lambda i: (0, 0), memory_space=vmem),
            pl.BlockSpec((PAD_H, PAD_N), lambda i: (0, 0), memory_space=vmem),
            pl.BlockSpec((1, PAD_N), lambda i: (0, 0), memory_space=vmem),
        ],
        out_specs=pl.BlockSpec((tile_b, PAD_N), lambda i: (i, 0), memory_space=vmem),
        compiler_params=pltpu.CompilerParams(
            dimension_semantics=("parallel",)),
    )(x_p, w1_p, b1_p, w2_p, b2_p)

    return out[:B, :N_ACTIONS]


# jit fuses the (tiny) pad/slice plumbing with the pallas_call into one launch.
net_forward = jax.jit(_net_forward_padded)


def init_params(key):
    k1, k2, k3, k4 = jax.random.split(key, 4)
    # weight.data.normal_(0, 0.1) as in the PyTorch module
    w1 = 0.1 * jax.random.normal(k1, (HIDDEN, N_STATES), jnp.float32)
    w2 = 0.1 * jax.random.normal(k2, (N_ACTIONS, HIDDEN), jnp.float32)
    # PyTorch Linear default bias init: U(-1/sqrt(fan_in), 1/sqrt(fan_in))
    bound1 = 1.0 / jnp.sqrt(jnp.float32(N_STATES))
    bound2 = 1.0 / jnp.sqrt(jnp.float32(HIDDEN))
    b1 = jax.random.uniform(k3, (HIDDEN,), jnp.float32, -bound1, bound1)
    b2 = jax.random.uniform(k4, (N_ACTIONS,), jnp.float32, -bound2, bound2)
    return w1, b1, w2, b2


if __name__ == "__main__":
    key = jax.random.PRNGKey(0)
    kx, kp = jax.random.split(key)
    batch = 2
    x = jax.random.normal(kx, (batch, N_STATES), jnp.float32)
    w1, b1, w2, b2 = init_params(kp)

    # One-time kernel-ready parameter layout (would live in the DQN training state).
    params = prepare_params(w1, b1, w2, b2)

    q_values = net_forward(x, *params)
    jax.block_until_ready(q_values)

    # Pure-JAX reference check against the original (unpadded) PyTorch semantics.
    ref = jnp.maximum(x @ w1.T + b1, 0.0) @ w2.T + b2
    assert q_values.shape == (batch, N_ACTIONS)
    assert jnp.allclose(q_values, ref, atol=1e-5, rtol=1e-5)

    # Also exercise a larger batch to cover the tiled/parallel grid path.
    xb = jax.random.normal(kx, (600, N_STATES), jnp.float32)
    qb = net_forward(xb, *params)
    jax.block_until_ready(qb)
    refb = jnp.maximum(xb @ w1.T + b1, 0.0) @ w2.T + b2
    assert qb.shape == (600, N_ACTIONS)
    assert jnp.allclose(qb, refb, atol=1e-4, rtol=1e-4)

    print("KERNEL_OK")
</pallas_src>

<mosaic_0001>
module attributes {stable_mosaic.version = 11 : i64} {
  func.func @_mlp_kernel(%arg0: i32, %arg1: memref<8x8xf32, #tpu.memory_space<vmem>>, %arg2: memref<8x128xf32, #tpu.memory_space<vmem>>, %arg3: memref<1x128xf32, #tpu.memory_space<vmem>>, %arg4: memref<128x128xf32, #tpu.memory_space<vmem>>, %arg5: memref<1x128xf32, #tpu.memory_space<vmem>>, %arg6: memref<8x128xf32, #tpu.memory_space<vmem>>) attributes {dimension_semantics = [#tpu.dimension_semantics<parallel>], iteration_bounds = array<i64: 1>, scalar_prefetch = 0 : i64, scratch_operands = 0 : i64, tpu.core_type = #tpu.core_type<tc>, window_params = [{transform_indices = @transform_0, window_bounds = array<i64: 8, 8>}, {pipeline_mode = #tpu.pipeline_mode<synchronous>, transform_indices = @transform_1, window_bounds = array<i64: 8, 128>}, {pipeline_mode = #tpu.pipeline_mode<synchronous>, transform_indices = @transform_2, window_bounds = array<i64: 1, 128>}, {pipeline_mode = #tpu.pipeline_mode<synchronous>, transform_indices = @transform_3, window_bounds = array<i64: 128, 128>}, {pipeline_mode = #tpu.pipeline_mode<synchronous>, transform_indices = @transform_4, window_bounds = array<i64: 1, 128>}, {transform_indices = @transform_5, window_bounds = array<i64: 8, 128>}]} {
    %c0 = arith.constant 0 : index
    %c0_0 = arith.constant 0 : index
    %0 = vector.load %arg1[%c0, %c0_0] : memref<8x8xf32, #tpu.memory_space<vmem>>, vector<8x8xf32>
    %c0_1 = arith.constant 0 : index
    %c0_2 = arith.constant 0 : index
    %1 = vector.load %arg2[%c0_1, %c0_2] : memref<8x128xf32, #tpu.memory_space<vmem>>, vector<8x128xf32>
    %cst = arith.constant dense<0.000000e+00> : vector<8x128xf32>
    %2 = tpu.matmul %0, %1, %cst {dimension_numbers = #tpu.dot_dimension_numbers<[1], [0], [0], [1], [0, 0, 1, 1], [], []>} : vector<8x8xf32>, vector<8x128xf32>, vector<8x128xf32> -> vector<8x128xf32>
    %c0_3 = arith.constant 0 : index
    %c0_4 = arith.constant 0 : index
    %3 = vector.load %arg3[%c0_3, %c0_4] : memref<1x128xf32, #tpu.memory_space<vmem>>, vector<1x128xf32>
    %4 = vector.broadcast %3 : vector<1x128xf32> to vector<8x128xf32>
    %5 = arith.addf %2, %4 : vector<8x128xf32>
    %cst_5 = arith.constant 0.000000e+00 : f32
    %6 = vector.broadcast %cst_5 : f32 to vector<8x128xf32>
    %7 = arith.maximumf %5, %6 : vector<8x128xf32>
    %c0_6 = arith.constant 0 : index
    %c0_7 = arith.constant 0 : index
    %8 = vector.load %arg4[%c0_6, %c0_7] : memref<128x128xf32, #tpu.memory_space<vmem>>, vector<128x128xf32>
    %cst_8 = arith.constant dense<0.000000e+00> : vector<8x128xf32>
    %9 = tpu.matmul %7, %8, %cst_8 {dimension_numbers = #tpu.dot_dimension_numbers<[1], [0], [0], [1], [0, 0, 1, 1], [], []>} : vector<8x128xf32>, vector<128x128xf32>, vector<8x128xf32> -> vector<8x128xf32>
    %c0_9 = arith.constant 0 : index
    %c0_10 = arith.constant 0 : index
    %10 = vector.load %arg5[%c0_9, %c0_10] : memref<1x128xf32, #tpu.memory_space<vmem>>, vector<1x128xf32>
    %11 = vector.broadcast %10 : vector<1x128xf32> to vector<8x128xf32>
    %12 = arith.addf %9, %11 : vector<8x128xf32>
    %c0_11 = arith.constant 0 : index
    %c0_12 = arith.constant 0 : index
    %13 = vector.load %arg6[%c0_11, %c0_12] : memref<8x128xf32, #tpu.memory_space<vmem>>, vector<8x128xf32>
    tpu.vector_store %arg6[%c0_11, %c0_12], %12 {strides = array<i32>} : memref<8x128xf32, #tpu.memory_space<vmem>>, vector<8x128xf32>,
    return
  }
  func.func @transform_0(%arg0: i32) -> (i32, i32) {
    %c0_i32 = arith.constant 0 : i32
    %c0_i32_0 = arith.constant 0 : i32
    return %arg0, %c0_i32 : i32, i32
  }
  func.func @transform_1(%arg0: i32) -> (i32, i32) {
    %c0_i32 = arith.constant 0 : i32
    %c0_i32_0 = arith.constant 0 : i32
    %c0_i32_1 = arith.constant 0 : i32
    return %c0_i32, %c0_i32_0 : i32, i32
  }
  func.func @transform_2(%arg0: i32) -> (i32, i32) {
    %c0_i32 = arith.constant 0 : i32
    %c0_i32_0 = arith.constant 0 : i32
    %c0_i32_1 = arith.constant 0 : i32
    return %c0_i32, %c0_i32_0 : i32, i32
  }
  func.func @transform_3(%arg0: i32) -> (i32, i32) {
    %c0_i32 = arith.constant 0 : i32
    %c0_i32_0 = arith.constant 0 : i32
    %c0_i32_1 = arith.constant 0 : i32
    return %c0_i32, %c0_i32_0 : i32, i32
  }
  func.func @transform_4(%arg0: i32) -> (i32, i32) {
    %c0_i32 = arith.constant 0 : i32
    %c0_i32_0 = arith.constant 0 : i32
    %c0_i32_1 = arith.constant 0 : i32
    return %c0_i32, %c0_i32_0 : i32, i32
  }
  func.func @transform_5(%arg0: i32) -> (i32, i32) {
    %c0_i32 = arith.constant 0 : i32
    %c0_i32_0 = arith.constant 0 : i32
    return %arg0, %c0_i32 : i32, i32
  }
}

</mosaic_0001>

<bundles_post_ra>
// kernel: _net_forward_padded.1
= control target key start
LH: loop header
LB: loop body
LE: loop exit
PB: predicated region body
PF: predicated region fallthrough
CT: control target
= control target key end

     0   :  { %10 = vsyncpa [#allocation3], 0  ;;  %s145_s21 = smov [#allocation2]   ;;  %s146_s23 = smov 128   ;;  %s196_s0 = inlined_call_operand.vmem [shape: f32[8,8], index: 0, kind: input, shape index: {}]   ;;  %s197_s1 = inlined_call_operand.vmem [shape: f32[8,128], index: 1, kind: input, shape index: {}]   ;;  %s198_s2 = inlined_call_operand.vmem [shape: f32[1,128], index: 2, kind: input, shape index: {}]   ;;  %s199_s3 = inlined_call_operand.hbm [shape: f32[128,128], index: 3, kind: input, shape index: {}]   ;;  %s200_s4 = inlined_call_operand.vmem [shape: f32[1,128], index: 4, kind: input, shape index: {}]   ;;  %s201_s5 = inlined_call_operand.vmem [shape: f32[8,128], index: 5, kind: output, shape index: {}]  }
   0x1   :  { %s21_s20 = sshll.u32 %s199_s3, 4  ;;  %s23_s22 = sshll.u32 %s145_s21, 4  ;;  %s22_s20 = int_to_ptr.hbm [resolvable:$true] %s21_s20  ;;  %s24_s22 = int_to_ptr.vmem [resolvable:$true] %s23_s22 }
   0x2   :  { %s147_s24 = smov 8  }
   0x3   :  { %29 = dma.hbm_to_vmem [thread:$0]  %s22_s20, 2048, %s24_s22, [#allocation3], %s146_s23, %s146_s23, %s147_s24  }
   0x4   :  { %143 = dma.done.wait [#allocation3], 2048  }
   0x5   :  { %144 = vsyncadd [#allocation3], 4294965248  ;;  %vm42_vm0 = vcmask 64512   ;;  %v37_v0 = vld [vmem:[%s197_s1] sm:$0xff]  ;;  %v82_v2 = vld [vmem:[#allocation2 + $0x78] sm:$0xff] }
   0x6   :  { %v36_v1 = vld [vmem:[%s196_s0] sm:$0xff]  ;;  %61 = vmatpush.msra.mxu0 %v37_v0  ;;  %87 = vmatpush.msra.mxu1 %v82_v2  ;;  %v81_v3 = vld [vmem:[#allocation2 + $0x70] sm:$0xff]  ;;  %v80_v4 = vld [vmem:[#allocation2 + $0x68] sm:$0xff] }
   0x7   :  { %113 = vmatmul.msk.f32.vlgmr.msra.gmra.mxu0 %vm42_vm0, %v36_v1  ;;  %v79_v5 = vld [vmem:[#allocation2 + $0x60] sm:$0xff]  ;;  %v78_v6 = vld [vmem:[#allocation2 + $0x58] sm:$0xff]  ;;  %v77_v7 = vld [vmem:[#allocation2 + $0x50] sm:$0xff] }
   0x8   :  { %88 = vmatpush.msra.mxu1 %v81_v3  ;;  %v76_v8 = vld [vmem:[#allocation2 + $0x48] sm:$0xff]  ;;  %v75_v9 = vld [vmem:[#allocation2 + $0x40] sm:$0xff]  ;;  %v74_v10 = vld [vmem:[#allocation2 + $0x38] sm:$0xff] }
   0x9   :  { %v73_v11 = vld [vmem:[#allocation2 + $0x30] sm:$0xff]  ;;  %v72_v12 = vld [vmem:[#allocation2 + $0x28] sm:$0xff]  ;;  %v71_v13 = vld [vmem:[#allocation2 + $0x20] sm:$0xff] }
   0xa   :  { %89 = vmatpush.msra.mxu1 %v80_v4  ;;  %v70_v14 = vld [vmem:[#allocation2 + $0x18] sm:$0xff]  ;;  %v69_v15 = vld [vmem:[#allocation2 + $0x10] sm:$0xff]  ;;  %v68_v16 = vld [vmem:[#allocation2 + $0x8] sm:$0xff] }
   0xb   :  { %v67_v17 = vld [vmem:[#allocation2] sm:$0xff] }
   0xc   :  { %90 = vmatpush.msra.mxu1 %v79_v5  ;;  %v117_v18 = vld [vmem:[%s198_s2] ss:$0 sm:$0xff] }
   0xd   :  { %v118_v22 = vld [vmem:[%s200_s4] ss:$0 sm:$0xff] }
   0xe   :  { %91 = vmatpush.msra.mxu1 %v78_v6 }
  0x10   :  { %92 = vmatpush.msra.mxu1 %v77_v7 }
  0x12   :  { %93 = vmatpush.msra.mxu1 %v76_v8 }
  0x14   :  { %94 = vmatpush.msra.mxu1 %v75_v9 }
  0x16   :  { %95 = vmatpush.msra.mxu1 %v74_v10 }
  0x18   :  { %96 = vmatpush.msra.mxu1 %v73_v11 }
  0x1a   :  { %97 = vmatpush.msra.mxu1 %v72_v12 }
  0x1c   :  { %98 = vmatpush.msra.mxu1 %v71_v13 }
  0x1e   :  { %99 = vmatpush.msra.mxu1 %v70_v14 }
  0x20   :  { %100 = vmatpush.msra.mxu1 %v69_v15 }
  0x22   :  { %101 = vmatpush.msra.mxu1 %v68_v16 }
  0x24   :  { %102 = vmatpush.msra.mxu1 %v67_v17 }
  0x84   :  { %v63_v19 = vpop.f32.mrf.mxu0 }
  0x85   :  { %v64_v20 = vadd.f32 %v117_v18, %v63_v19 }
  0x87   :  { %v66_v21 = vmax.f32 %v64_v20, 0.0 }
  0x89   :  { %103 = vmatmul.f32.vlgmr.msra.gmra.mxu1 %v66_v21 }
 0x106   :  { %v104_v23 = vpop.f32.mrf.mxu1 }
 0x107   :  { %v105_v24 = vadd.f32 %v118_v22, %v104_v23 }
 0x109   :  { %107 = vst [vmem:[%s201_s5] sm:$0xff] %v105_v24 }
 0x10a   :  { %112 = vsyncpa [#allocation3], 1 }

</bundles_post_ra>
